<compile_context>
chip_gen: v5e
topology: v5e:2x2
jax: 0.10.0
libtpu: 0.0.40
codegen_flags: <defaults>
</compile_context>

<pallas_src>
import functools

import jax
import jax.numpy as jnp
from jax.experimental import pallas as pl
from jax.experimental.pallas import tpu as pltpu


def routing_kernel(x_ref, w_ref, seg_ref, o_ref, *, num_iterations,
                   num_input_capsules):
    # x_ref:   (I, block_b, Di)   matmul dtype (bf16 or f32)
    # w_ref:   (I, O*Do, Di)      matmul dtype
    # seg_ref: (O*Do, O*Do)       f32 block-diagonal ones (segments of Do lanes)
    # o_ref:   (block_b, O*Do)    f32, lane-dense output slab
    x = x_ref[...]
    w = w_ref[...]
    seg = seg_ref[...]

    # priors[i, b, od] = sum_d x[i, b, d] * w[i, od, d]
    # Single batched-over-I contraction, N = O*Do = 128 lanes, f32 accumulation.
    priors = jax.lax.dot_general(
        x, w,
        dimension_numbers=(((2,), (2,)), ((0,), (0,))),
        preferred_element_type=jnp.float32,
    )                                                   # (I, block_b, O*Do) f32

    inv_i = jnp.float32(1.0 / num_input_capsules)

    def squash(s):
        # Per-output-capsule squared norm, broadcast back across each capsule's Do
        # lanes via a block-diagonal ones matmul (keeps everything lane-aligned).
        sq = jax.lax.dot_general(
            s * s, seg,
            dimension_numbers=(((1,), (0,)), ((), ())),
            preferred_element_type=jnp.float32,
        )                                               # (block_b, O*Do)
        # squash(s) = (||s||^2/(1+||s||^2)) * s/||s||  ==  s * ||s|| / (1+||s||^2)
        return s * jnp.sqrt(sq) * pl.reciprocal(1.0 + sq, approx=True)

    # Iteration 0: logits are all zero -> softmax is the uniform 1/I weighting.
    s = jnp.sum(priors, axis=0) * inv_i                 # (block_b, O*Do)
    outputs = squash(s)

    logits = None
    # num_iterations is a static Python int -> unrolled at trace time.
    for _ in range(1, num_iterations):
        delta = priors * outputs[None, :, :]            # (I, block_b, O*Do)
        logits = delta if logits is None else logits + delta
        m = jnp.max(logits, axis=0, keepdims=True)
        e = jnp.exp(logits - m)                         # (I, block_b, O*Do)
        denom = jnp.sum(e, axis=0)                      # (block_b, O*Do)
        s = jnp.sum(e * priors, axis=0) * pl.reciprocal(denom, approx=True)
        outputs = squash(s)

    o_ref[...] = outputs.astype(o_ref.dtype)


def routing_layer_forward(x, route_weights, num_iterations, *, block_b=None,
                          matmul_dtype=jnp.bfloat16):
    """x: (B, data_in, num_input_capsules), route_weights: (O, I, Do, Di).

    Returns (B, Do, O), matching the PyTorch module output (random=False, dropout=0).
    """
    B, Di, I = x.shape
    O, I_w, Do, Di_w = route_weights.shape
    assert I == I_w and Di == Di_w
    assert num_iterations >= 1
    OD = O * Do

    # x (B, Di, I) -> (I, B, Di): batch axis of the per-input-capsule matmul leading.
    x_t = jnp.transpose(x, (2, 0, 1))
    # route_weights (O, I, Do, Di) -> (I, O*Do, Di): one wide batched matmul.
    w2 = jnp.transpose(route_weights, (1, 0, 2, 3)).reshape(I, OD, Di)
    # Block-diagonal ones matrix: seg[j, k] = 1 iff j and k belong to the same
    # output capsule (same Do-lane segment). Used for the segmented squared norm.
    seg = (jnp.arange(OD)[:, None] // Do
           == jnp.arange(OD)[None, :] // Do).astype(jnp.float32)

    # Batch tiling: one tile for tiny B (fewest grid steps); for larger B use
    # 8-aligned tiles with >=2 grid steps so v7x can shard across its two
    # TensorCores and VMEM residency (priors/logits are (I, block_b, O*Do) f32)
    # stays bounded on its 64 MiB VMEM.
    if block_b is None:
        block_b = B if B <= 8 else min(128, 8 * pl.cdiv(B, 16))
    grid_b = pl.cdiv(B, block_b)
    B_pad = grid_b * block_b
    if B_pad != B:
        x_t = jnp.pad(x_t, ((0, 0), (0, B_pad - B), (0, 0)))

    # bf16 MXU operands (f32 accumulation); routing element-wise math stays f32.
    x_t = x_t.astype(matmul_dtype)
    w2 = w2.astype(matmul_dtype)

    out = pl.pallas_call(
        functools.partial(routing_kernel, num_iterations=num_iterations,
                          num_input_capsules=I),
        out_shape=jax.ShapeDtypeStruct((B_pad, OD), jnp.float32),
        grid_spec=pltpu.PrefetchScalarGridSpec(
            num_scalar_prefetch=0,
            grid=(grid_b,),
            in_specs=[
                pl.BlockSpec((I, block_b, Di), lambda b: (0, b, 0)),
                pl.BlockSpec((I, OD, Di), lambda b: (0, 0, 0)),   # grid-invariant
                pl.BlockSpec((OD, OD), lambda b: (0, 0)),         # grid-invariant
            ],
            out_specs=pl.BlockSpec((block_b, OD), lambda b: (b, 0)),
        ),
        compiler_params=pltpu.CompilerParams(
            dimension_semantics=("parallel",),
            # Explicit scoped-VMEM budget; re-derive (together with block_b) when
            # scaling B / I, especially for v7x's 64 MiB VMEM.
            vmem_limit_bytes=32 * 1024 * 1024,
        ),
    )(x_t, w2, seg)                                      # (B_pad, O*Do)

    out = out[:B]
    # (B, O*Do) -> (B, O, Do) -> (B, Do, O), matching torch's squeeze+transpose(2,1).
    return jnp.transpose(out.reshape(B, O, Do), (0, 2, 1))


def routing_layer_reference(x, route_weights, num_iterations):
    """Pure-JAX reference mirroring the torch code (random=False, dropout=0)."""
    x_t = jnp.transpose(x, (0, 2, 1))                        # (B, I, Di)
    priors = jnp.einsum("oiDd,bid->boiD", route_weights, x_t)  # (B, O, I, Do)
    logits = jnp.zeros_like(priors)
    outputs = None
    for it in range(num_iterations):
        probs = jax.nn.softmax(logits, axis=2)
        s = jnp.sum(probs * priors, axis=2, keepdims=True)   # (B, O, 1, Do)
        sq = jnp.sum(s * s, axis=3, keepdims=True)
        outputs = (sq / (1 + sq)) * s / jnp.sqrt(sq)
        if it != num_iterations - 1:
            logits = logits + priors * outputs
    out = outputs[:, :, 0, :]                                # (B, O, Do)
    return jnp.transpose(out, (0, 2, 1))                     # (B, Do, O)


if __name__ == "__main__":
    # Module hyperparameters (small, consistent with the forward pass).
    num_input_capsules = 8     # I
    num_output_capsules = 4    # O
    data_in = 16               # Di
    data_out = 32              # Do  -> O*Do = 128 lane-dense output slab
    num_iterations = 3
    batch = 2                  # B

    key = jax.random.PRNGKey(0)
    k_w, k_x = jax.random.split(key)

    # nn.Parameter(torch.randn(O, I, Do, Di)) -> standard normal init.
    route_weights = jax.random.normal(
        k_w, (num_output_capsules, num_input_capsules, data_out, data_in),
        dtype=jnp.float32)
    # Input as the module expects pre-transpose: (B, data_in, num_input_capsules).
    x = jax.random.normal(k_x, (batch, data_in, num_input_capsules),
                          dtype=jnp.float32)

    ref = routing_layer_reference(x, route_weights, num_iterations)

    # f32 MXU operands: tight check of the routing logic (only approx-reciprocal drift).
    out_f32 = jax.block_until_ready(
        routing_layer_forward(x, route_weights, num_iterations,
                              matmul_dtype=jnp.float32))
    assert out_f32.shape == (batch, data_out, num_output_capsules), out_f32.shape
    err_f32 = float(jnp.max(jnp.abs(out_f32 - ref)))
    assert err_f32 < 2e-2, err_f32

    # Default bf16 MXU operands (v6e/v5e feedback): looser tolerance for bf16 rounding.
    out_bf16 = jax.block_until_ready(
        routing_layer_forward(x, route_weights, num_iterations))
    assert out_bf16.shape == (batch, data_out, num_output_capsules), out_bf16.shape
    err_bf16 = float(jnp.max(jnp.abs(out_bf16 - ref)))
    assert err_bf16 < 5e-2, err_bf16

    print("KERNEL_OK")
</pallas_src>

<mosaic_0001>
module attributes {stable_mosaic.version = 11 : i64} {
  func.func @routing_kernel(%arg0: i32, %arg1: memref<8x2x16xf32, #tpu.memory_space<vmem>>, %arg2: memref<8x128x16xf32, #tpu.memory_space<vmem>>, %arg3: memref<128x128xf32, #tpu.memory_space<vmem>>, %arg4: memref<2x128xf32, #tpu.memory_space<vmem>>) attributes {dimension_semantics = [#tpu.dimension_semantics<parallel>], iteration_bounds = array<i64: 1>, scalar_prefetch = 0 : i64, scratch_operands = 0 : i64, tpu.core_type = #tpu.core_type<tc>, window_params = [{transform_indices = @transform_0, window_bounds = array<i64: 8, 2, 16>}, {pipeline_mode = #tpu.pipeline_mode<synchronous>, transform_indices = @transform_1, window_bounds = array<i64: 8, 128, 16>}, {pipeline_mode = #tpu.pipeline_mode<synchronous>, transform_indices = @transform_2, window_bounds = array<i64: 128, 128>}, {transform_indices = @transform_3, window_bounds = array<i64: 2, 128>}]} {
    %c0 = arith.constant 0 : index
    %c0_0 = arith.constant 0 : index
    %c0_1 = arith.constant 0 : index
    %0 = vector.load %arg1[%c0, %c0_0, %c0_1] : memref<8x2x16xf32, #tpu.memory_space<vmem>>, vector<8x2x16xf32>
    %c0_2 = arith.constant 0 : index
    %c0_3 = arith.constant 0 : index
    %c0_4 = arith.constant 0 : index
    %1 = vector.load %arg2[%c0_2, %c0_3, %c0_4] : memref<8x128x16xf32, #tpu.memory_space<vmem>>, vector<8x128x16xf32>
    %c0_5 = arith.constant 0 : index
    %c0_6 = arith.constant 0 : index
    %2 = vector.load %arg3[%c0_5, %c0_6] : memref<128x128xf32, #tpu.memory_space<vmem>>, vector<128x128xf32>
    %cst = arith.constant dense<0.000000e+00> : vector<8x2x128xf32>
    %3 = tpu.matmul %0, %1, %cst {dimension_numbers = #tpu.dot_dimension_numbers<[2], [2], [1], [1], [0, 0, 0, 1, 1, 1], [0], [0]>} : vector<8x2x16xf32>, vector<8x128x16xf32>, vector<8x2x128xf32> -> vector<8x2x128xf32>
    %cst_7 = arith.constant dense<0.000000e+00> : vector<2x128xf32>
    %4 = vector.multi_reduction <add>, %3, %cst_7 [0] : vector<8x2x128xf32> to vector<2x128xf32>
    %cst_8 = arith.constant 1.250000e-01 : f32
    %5 = vector.broadcast %cst_8 : f32 to vector<2x128xf32>
    %6 = arith.mulf %4, %5 : vector<2x128xf32>
    %7 = arith.mulf %6, %6 : vector<2x128xf32>
    %cst_9 = arith.constant dense<0.000000e+00> : vector<2x128xf32>
    %8 = tpu.matmul %7, %2, %cst_9 {dimension_numbers = #tpu.dot_dimension_numbers<[1], [0], [0], [1], [0, 0, 1, 1], [], []>} : vector<2x128xf32>, vector<128x128xf32>, vector<2x128xf32> -> vector<2x128xf32>
    %9 = math.sqrt %8 : vector<2x128xf32>
    %10 = arith.mulf %6, %9 : vector<2x128xf32>
    %cst_10 = arith.constant 1.000000e+00 : f32
    %11 = vector.broadcast %cst_10 : f32 to vector<2x128xf32>
    %12 = arith.addf %11, %8 : vector<2x128xf32>
    %13 = tpu.reciprocal %12 {approx = true} : vector<2x128xf32> -> vector<2x128xf32>
    %14 = arith.mulf %10, %13 : vector<2x128xf32>
    %15 = vector.shape_cast %14 : vector<2x128xf32> to vector<1x2x128xf32>
    %16 = vector.broadcast %15 : vector<1x2x128xf32> to vector<8x2x128xf32>
    %17 = arith.mulf %3, %16 : vector<8x2x128xf32>
    %cst_11 = arith.constant dense<0xFF800000> : vector<2x128xf32>
    %18 = vector.multi_reduction <maximumf>, %17, %cst_11 [0] : vector<8x2x128xf32> to vector<2x128xf32>
    %19 = vector.shape_cast %18 : vector<2x128xf32> to vector<1x2x128xf32>
    %20 = vector.broadcast %19 : vector<1x2x128xf32> to vector<8x2x128xf32>
    %21 = arith.subf %17, %20 : vector<8x2x128xf32>
    %22 = math.exp %21 : vector<8x2x128xf32>
    %cst_12 = arith.constant dense<0.000000e+00> : vector<2x128xf32>
    %23 = vector.multi_reduction <add>, %22, %cst_12 [0] : vector<8x2x128xf32> to vector<2x128xf32>
    %24 = arith.mulf %22, %3 : vector<8x2x128xf32>
    %cst_13 = arith.constant dense<0.000000e+00> : vector<2x128xf32>
    %25 = vector.multi_reduction <add>, %24, %cst_13 [0] : vector<8x2x128xf32> to vector<2x128xf32>
    %26 = tpu.reciprocal %23 {approx = true} : vector<2x128xf32> -> vector<2x128xf32>
    %27 = arith.mulf %25, %26 : vector<2x128xf32>
    %28 = arith.mulf %27, %27 : vector<2x128xf32>
    %cst_14 = arith.constant dense<0.000000e+00> : vector<2x128xf32>
    %29 = tpu.matmul %28, %2, %cst_14 {dimension_numbers = #tpu.dot_dimension_numbers<[1], [0], [0], [1], [0, 0, 1, 1], [], []>} : vector<2x128xf32>, vector<128x128xf32>, vector<2x128xf32> -> vector<2x128xf32>
    %30 = math.sqrt %29 : vector<2x128xf32>
    %31 = arith.mulf %27, %30 : vector<2x128xf32>
    %cst_15 = arith.constant 1.000000e+00 : f32
    %32 = vector.broadcast %cst_15 : f32 to vector<2x128xf32>
    %33 = arith.addf %32, %29 : vector<2x128xf32>
    %34 = tpu.reciprocal %33 {approx = true} : vector<2x128xf32> -> vector<2x128xf32>
    %35 = arith.mulf %31, %34 : vector<2x128xf32>
    %36 = vector.shape_cast %35 : vector<2x128xf32> to vector<1x2x128xf32>
    %37 = vector.broadcast %36 : vector<1x2x128xf32> to vector<8x2x128xf32>
    %38 = arith.mulf %3, %37 : vector<8x2x128xf32>
    %39 = arith.addf %17, %38 : vector<8x2x128xf32>
    %cst_16 = arith.constant dense<0xFF800000> : vector<2x128xf32>
    %40 = vector.multi_reduction <maximumf>, %39, %cst_16 [0] : vector<8x2x128xf32> to vector<2x128xf32>
    %41 = vector.shape_cast %40 : vector<2x128xf32> to vector<1x2x128xf32>
    %42 = vector.broadcast %41 : vector<1x2x128xf32> to vector<8x2x128xf32>
    %43 = arith.subf %39, %42 : vector<8x2x128xf32>
    %44 = math.exp %43 : vector<8x2x128xf32>
    %cst_17 = arith.constant dense<0.000000e+00> : vector<2x128xf32>
    %45 = vector.multi_reduction <add>, %44, %cst_17 [0] : vector<8x2x128xf32> to vector<2x128xf32>
    %46 = arith.mulf %44, %3 : vector<8x2x128xf32>
    %cst_18 = arith.constant dense<0.000000e+00> : vector<2x128xf32>
    %47 = vector.multi_reduction <add>, %46, %cst_18 [0] : vector<8x2x128xf32> to vector<2x128xf32>
    %48 = tpu.reciprocal %45 {approx = true} : vector<2x128xf32> -> vector<2x128xf32>
    %49 = arith.mulf %47, %48 : vector<2x128xf32>
    %50 = arith.mulf %49, %49 : vector<2x128xf32>
    %cst_19 = arith.constant dense<0.000000e+00> : vector<2x128xf32>
    %51 = tpu.matmul %50, %2, %cst_19 {dimension_numbers = #tpu.dot_dimension_numbers<[1], [0], [0], [1], [0, 0, 1, 1], [], []>} : vector<2x128xf32>, vector<128x128xf32>, vector<2x128xf32> -> vector<2x128xf32>
    %52 = math.sqrt %51 : vector<2x128xf32>
    %53 = arith.mulf %49, %52 : vector<2x128xf32>
    %cst_20 = arith.constant 1.000000e+00 : f32
    %54 = vector.broadcast %cst_20 : f32 to vector<2x128xf32>
    %55 = arith.addf %54, %51 : vector<2x128xf32>
    %56 = tpu.reciprocal %55 {approx = true} : vector<2x128xf32> -> vector<2x128xf32>
    %57 = arith.mulf %53, %56 : vector<2x128xf32>
    %c0_21 = arith.constant 0 : index
    %c0_22 = arith.constant 0 : index
    %58 = vector.load %arg4[%c0_21, %c0_22] : memref<2x128xf32, #tpu.memory_space<vmem>>, vector<2x128xf32>
    tpu.vector_store %arg4[%c0_21, %c0_22], %57 {strides = array<i32>} : memref<2x128xf32, #tpu.memory_space<vmem>>, vector<2x128xf32>,
    return
  }
  func.func @transform_0(%arg0: i32) -> (i32, i32, i32) {
    %c0_i32 = arith.constant 0 : i32
    %c0_i32_0 = arith.constant 0 : i32
    %c0_i32_1 = arith.constant 0 : i32
    return %c0_i32, %arg0, %c0_i32_0 : i32, i32, i32
  }
  func.func @transform_1(%arg0: i32) -> (i32, i32, i32) {
    %c0_i32 = arith.constant 0 : i32
    %c0_i32_0 = arith.constant 0 : i32
    %c0_i32_1 = arith.constant 0 : i32
    %c0_i32_2 = arith.constant 0 : i32
    return %c0_i32, %c0_i32_0, %c0_i32_1 : i32, i32, i32
  }
  func.func @transform_2(%arg0: i32) -> (i32, i32) {
    %c0_i32 = arith.constant 0 : i32
    %c0_i32_0 = arith.constant 0 : i32
    %c0_i32_1 = arith.constant 0 : i32
    return %c0_i32, %c0_i32_0 : i32, i32
  }
  func.func @transform_3(%arg0: i32) -> (i32, i32) {
    %c0_i32 = arith.constant 0 : i32
    %c0_i32_0 = arith.constant 0 : i32
    return %arg0, %c0_i32 : i32, i32
  }
}

</mosaic_0001>

<bundles_post_ra>
// kernel: tpu_custom_call.1
= control target key start
LH: loop header
LB: loop body
LE: loop exit
PB: predicated region body
PF: predicated region fallthrough
CT: control target
= control target key end

     0   :  { %vm167_vm0 = vcmask 130048   ;;  %s2042_s0 = inlined_call_operand.vmem [shape: f32[8,2,16], index: 0, kind: input, shape index: {}]   ;;  %s2043_s1 = inlined_call_operand.vmem [shape: f32[8,128,16], index: 1, kind: input, shape index: {}]   ;;  %s2044_s2 = inlined_call_operand.vmem [shape: f32[128,128], index: 2, kind: input, shape index: {}]   ;;  %s2045_s3 = inlined_call_operand.hbm [shape: f32[2,128], index: 3, kind: output, shape index: {}]  }
   0x1   :  { %v38_v0 = vld [vmem:[%s2043_s1 + $0x78] sm:$0xff]  ;;  %v37_v4 = vld [vmem:[%s2043_s1 + $0x70] sm:$0xff]  ;;  %v36_v8 = vld [vmem:[%s2043_s1 + $0x68] sm:$0xff] }
   0x2   :  { %v70_v1 = vld [vmem:[%s2043_s1 + $0x178] sm:$0xff]  ;;  %1063 = vmatpush.xpose.msk.msra.mxu0 %vm167_vm0, %v38_v0  ;;  %v69_v5 = vld [vmem:[%s2043_s1 + $0x170] sm:$0xff]  ;;  %v68_v9 = vld [vmem:[%s2043_s1 + $0x168] sm:$0xff] }
   0x3   :  { %v54_v2 = vld [vmem:[%s2043_s1 + $0xf8] sm:$0xff]  ;;  %1097 = vmatpush.xpose.msk.msra.mxu2 %vm167_vm0, %v70_v1  ;;  %v53_v6 = vld [vmem:[%s2043_s1 + $0xf0] sm:$0xff]  ;;  %v52_v10 = vld [vmem:[%s2043_s1 + $0xe8] sm:$0xff] }
   0x4   :  { %v86_v3 = vld [vmem:[%s2043_s1 + $0x1f8] sm:$0xff]  ;;  %1080 = vmatpush.xpose.msk.msra.mxu1 %vm167_vm0, %v54_v2  ;;  %v85_v7 = vld [vmem:[%s2043_s1 + $0x1f0] sm:$0xff]  ;;  %v84_v11 = vld [vmem:[%s2043_s1 + $0x1e8] sm:$0xff] }
   0x5   :  { %1114 = vmatpush.xpose.msk.msra.mxu3 %vm167_vm0, %v86_v3  ;;  %v35_v12 = vld [vmem:[%s2043_s1 + $0x60] sm:$0xff]  ;;  %v34_v16 = vld [vmem:[%s2043_s1 + $0x58] sm:$0xff] }
   0x6   :  { %1064 = vmatpush.xpose.msk.msra.mxu0 %vm167_vm0, %v37_v4  ;;  %v67_v13 = vld [vmem:[%s2043_s1 + $0x160] sm:$0xff]  ;;  %v66_v17 = vld [vmem:[%s2043_s1 + $0x158] sm:$0xff] }
   0x7   :  { %1098 = vmatpush.xpose.msk.msra.mxu2 %vm167_vm0, %v69_v5  ;;  %v51_v14 = vld [vmem:[%s2043_s1 + $0xe0] sm:$0xff]  ;;  %v50_v18 = vld [vmem:[%s2043_s1 + $0xd8] sm:$0xff] }
   0x8   :  { %1081 = vmatpush.xpose.msk.msra.mxu1 %vm167_vm0, %v53_v6  ;;  %v83_v15 = vld [vmem:[%s2043_s1 + $0x1e0] sm:$0xff]  ;;  %v82_v19 = vld [vmem:[%s2043_s1 + $0x1d8] sm:$0xff] }
   0x9   :  { %1115 = vmatpush.xpose.msk.msra.mxu3 %vm167_vm0, %v85_v7 }
   0xa   :  { %1065 = vmatpush.xpose.msk.msra.mxu0 %vm167_vm0, %v36_v8 }
   0xb   :  { %1099 = vmatpush.xpose.msk.msra.mxu2 %vm167_vm0, %v68_v9 }
   0xc   :  { %1082 = vmatpush.xpose.msk.msra.mxu1 %vm167_vm0, %v52_v10 }
   0xd   :  { %1116 = vmatpush.xpose.msk.msra.mxu3 %vm167_vm0, %v84_v11 }
   0xe   :  { %1066 = vmatpush.xpose.msk.msra.mxu0 %vm167_vm0, %v35_v12 }
   0xf   :  { %1100 = vmatpush.xpose.msk.msra.mxu2 %vm167_vm0, %v67_v13 }
  0x10   :  { %1083 = vmatpush.xpose.msk.msra.mxu1 %vm167_vm0, %v51_v14 }
  0x11   :  { %1117 = vmatpush.xpose.msk.msra.mxu3 %vm167_vm0, %v83_v15 }
  0x12   :  { %8 = vsyncpa [#allocation3], 0  ;;  %1067 = vmatpush.xpose.msk.msra.mxu0 %vm167_vm0, %v34_v16  ;;  %v33_v20 = vld [vmem:[%s2043_s1 + $0x50] sm:$0xff]  ;;  %v32_v24 = vld [vmem:[%s2043_s1 + $0x48] sm:$0xff]  ;;  %vm736_vm1 = vcmask 1041408   ;;  %s1054_s19 = sshll.u32 %s2045_s3, 4  ;;  %s1055_s19 = int_to_ptr.hbm [resolvable:$true] %s1054_s19 }
  0x13   :  { %1101 = vmatpush.xpose.msk.msra.mxu2 %vm167_vm0, %v66_v17  ;;  %v65_v21 = vld [vmem:[%s2043_s1 + $0x150] sm:$0xff]  ;;  %v64_v25 = vld [vmem:[%s2043_s1 + $0x148] sm:$0xff]  ;;  %v31_v28 = vld [vmem:[%s2043_s1 + $0x40] sm:$0xff] }
  0x14   :  { %1084 = vmatpush.xpose.msk.msra.mxu1 %vm167_vm0, %v50_v18  ;;  %v49_v22 = vld [vmem:[%s2043_s1 + $0xd0] sm:$0xff]  ;;  %v48_v26 = vld [vmem:[%s2043_s1 + $0xc8] sm:$0xff]  ;;  %v63_v29 = vld [vmem:[%s2043_s1 + $0x140] sm:$0xff] }
  0x15   :  { %1118 = vmatpush.xpose.msk.msra.mxu3 %vm167_vm0, %v82_v19  ;;  %v81_v23 = vld [vmem:[%s2043_s1 + $0x1d0] sm:$0xff]  ;;  %v80_v27 = vld [vmem:[%s2043_s1 + $0x1c8] sm:$0xff]  ;;  %v47_v30 = vld [vmem:[%s2043_s1 + $0xc0] sm:$0xff] }
  0x16   :  { %1068 = vmatpush.xpose.msk.msra.mxu0 %vm167_vm0, %v33_v20  ;;  %v79_v31 = vld [vmem:[%s2043_s1 + $0x1c0] sm:$0xff]  ;;  %v30_v32 = vld [vmem:[%s2043_s1 + $0x38] sm:$0xff]  ;;  %v29_v36 = vld [vmem:[%s2043_s1 + $0x30] sm:$0xff] }
  0x17   :  { %1102 = vmatpush.xpose.msk.msra.mxu2 %vm167_vm0, %v65_v21  ;;  %v62_v33 = vld [vmem:[%s2043_s1 + $0x138] sm:$0xff]  ;;  %v61_v37 = vld [vmem:[%s2043_s1 + $0x130] sm:$0xff]  ;;  %v28_v40 = vld [vmem:[%s2043_s1 + $0x28] sm:$0xff] }
  0x18   :  { %1085 = vmatpush.xpose.msk.msra.mxu1 %vm167_vm0, %v49_v22  ;;  %v46_v34 = vld [vmem:[%s2043_s1 + $0xb8] sm:$0xff]  ;;  %v45_v38 = vld [vmem:[%s2043_s1 + $0xb0] sm:$0xff]  ;;  %v60_v41 = vld [vmem:[%s2043_s1 + $0x128] sm:$0xff] }
  0x19   :  { %1119 = vmatpush.xpose.msk.msra.mxu3 %vm167_vm0, %v81_v23  ;;  %v78_v35 = vld [vmem:[%s2043_s1 + $0x1b8] sm:$0xff]  ;;  %v77_v39 = vld [vmem:[%s2043_s1 + $0x1b0] sm:$0xff]  ;;  %v44_v42 = vld [vmem:[%s2043_s1 + $0xa8] sm:$0xff] }
  0x1a   :  { %1069 = vmatpush.xpose.msk.msra.mxu0 %vm167_vm0, %v32_v24  ;;  %v76_v43 = vld [vmem:[%s2043_s1 + $0x1a8] sm:$0xff]  ;;  %v27_v44 = vld [vmem:[%s2043_s1 + $0x20] sm:$0xff]  ;;  %v26_v48 = vld [vmem:[%s2043_s1 + $0x18] sm:$0xff] }
  0x1b   :  { %1103 = vmatpush.xpose.msk.msra.mxu2 %vm167_vm0, %v64_v25  ;;  %v59_v45 = vld [vmem:[%s2043_s1 + $0x120] sm:$0xff]  ;;  %v58_v49 = vld [vmem:[%s2043_s1 + $0x118] sm:$0xff]  ;;  %v25_v52 = vld [vmem:[%s2043_s1 + $0x10] sm:$0xff] }
  0x1c   :  { %1086 = vmatpush.xpose.msk.msra.mxu1 %vm167_vm0, %v48_v26  ;;  %v43_v46 = vld [vmem:[%s2043_s1 + $0xa0] sm:$0xff]  ;;  %v42_v50 = vld [vmem:[%s2043_s1 + $0x98] sm:$0xff]  ;;  %v57_v53 = vld [vmem:[%s2043_s1 + $0x110] sm:$0xff] }
  0x1d   :  { %1120 = vmatpush.xpose.msk.msra.mxu3 %vm167_vm0, %v80_v27  ;;  %v75_v47 = vld [vmem:[%s2043_s1 + $0x1a0] sm:$0xff]  ;;  %v74_v51 = vld [vmem:[%s2043_s1 + $0x198] sm:$0xff]  ;;  %v41_v54 = vld [vmem:[%s2043_s1 + $0x90] sm:$0xff] }
  0x1e   :  { %1070 = vmatpush.xpose.msk.msra.mxu0 %vm167_vm0, %v31_v28  ;;  %v73_v55 = vld [vmem:[%s2043_s1 + $0x190] sm:$0xff]  ;;  %v24_v56 = vld [vmem:[%s2043_s1 + $0x8] sm:$0xff]  ;;  %v23_v60 = vld [vmem:[%s2043_s1] sm:$0xff] }
  0x1f   :  { %1104 = vmatpush.xpose.msk.msra.mxu2 %vm167_vm0, %v63_v29  ;;  %v56_v57 = vld [vmem:[%s2043_s1 + $0x108] sm:$0xff]  ;;  %v55_v61 = vld [vmem:[%s2043_s1 + $0x100] sm:$0xff]  ;;  %v102_v62 = vld [vmem:[%s2043_s1 + $0x278] sm:$0xff] }
  0x20   :  { %1087 = vmatpush.xpose.msk.msra.mxu1 %vm167_vm0, %v47_v30  ;;  %v40_v58 = vld [vmem:[%s2043_s1 + $0x88] sm:$0xff]  ;;  %v134_v63 = vld [vmem:[%s2043_s1 + $0x378] sm:$0xff]  ;;  %v39_v0 = vld [vmem:[%s2043_s1 + $0x80] sm:$0xff] }
  0x21   :  { %1121 = vmatpush.xpose.msk.msra.mxu3 %vm167_vm0, %v79_v31  ;;  %v72_v59 = vld [vmem:[%s2043_s1 + $0x188] sm:$0xff]  ;;  %v71_v1 = vld [vmem:[%s2043_s1 + $0x180] sm:$0xff]  ;;  %v118_v2 = vld [vmem:[%s2043_s1 + $0x2f8] sm:$0xff] }
  0x22   :  { %1071 = vmatpush.xpose.msk.msra.mxu0 %vm167_vm0, %v30_v32  ;;  %v150_v3 = vld [vmem:[%s2043_s1 + $0x3f8] sm:$0xff]  ;;  %v101_v4 = vld [vmem:[%s2043_s1 + $0x270] sm:$0xff]  ;;  %v100_v8 = vld [vmem:[%s2043_s1 + $0x268] sm:$0xff] }
  0x23   :  { %1105 = vmatpush.xpose.msk.msra.mxu2 %vm167_vm0, %v62_v33  ;;  %v133_v5 = vld [vmem:[%s2043_s1 + $0x370] sm:$0xff]  ;;  %v132_v9 = vld [vmem:[%s2043_s1 + $0x368] sm:$0xff]  ;;  %v99_v12 = vld [vmem:[%s2043_s1 + $0x260] sm:$0xff] }
  0x24   :  { %1088 = vmatpush.xpose.msk.msra.mxu1 %vm167_vm0, %v46_v34  ;;  %v117_v6 = vld [vmem:[%s2043_s1 + $0x2f0] sm:$0xff]  ;;  %v116_v10 = vld [vmem:[%s2043_s1 + $0x2e8] sm:$0xff]  ;;  %v131_v13 = vld [vmem:[%s2043_s1 + $0x360] sm:$0xff] }
  0x25   :  { %1122 = vmatpush.xpose.msk.msra.mxu3 %vm167_vm0, %v78_v35  ;;  %v149_v7 = vld [vmem:[%s2043_s1 + $0x3f0] sm:$0xff]  ;;  %v148_v11 = vld [vmem:[%s2043_s1 + $0x3e8] sm:$0xff]  ;;  %v115_v14 = vld [vmem:[%s2043_s1 + $0x2e0] sm:$0xff] }
  0x26   :  { %1072 = vmatpush.xpose.msk.msra.mxu0 %vm167_vm0, %v29_v36  ;;  %v147_v15 = vld [vmem:[%s2043_s1 + $0x3e0] sm:$0xff]  ;;  %v98_v16 = vld [vmem:[%s2043_s1 + $0x258] sm:$0xff]  ;;  %v97_v20 = vld [vmem:[%s2043_s1 + $0x250] sm:$0xff] }
  0x27   :  { %1106 = vmatpush.xpose.msk.msra.mxu2 %vm167_vm0, %v61_v37  ;;  %v130_v17 = vld [vmem:[%s2043_s1 + $0x358] sm:$0xff]  ;;  %v129_v21 = vld [vmem:[%s2043_s1 + $0x350] sm:$0xff]  ;;  %v17_v24 = vld [vmem:[%s2042_s0 + $0x4] sm:$0x3] }
  0x28   :  { %1089 = vmatpush.xpose.msk.msra.mxu1 %vm167_vm0, %v45_v38  ;;  %v114_v18 = vld [vmem:[%s2043_s1 + $0x2d8] sm:$0xff]  ;;  %v113_v22 = vld [vmem:[%s2043_s1 + $0x2d0] sm:$0xff]  ;;  %v96_v25 = vld [vmem:[%s2043_s1 + $0x248] sm:$0xff] }
  0x29   :  { %1123 = vmatpush.xpose.msk.msra.mxu3 %vm167_vm0, %v77_v39  ;;  %v146_v19 = vld [vmem:[%s2043_s1 + $0x3d8] sm:$0xff]  ;;  %v145_v23 = vld [vmem:[%s2043_s1 + $0x3d0] sm:$0xff]  ;;  %v128_v26 = vld [vmem:[%s2043_s1 + $0x348] sm:$0xff] }
  0x2a   :  { %1073 = vmatpush.xpose.msk.msra.mxu0 %vm167_vm0, %v28_v40  ;;  %v15_v27 = vld [vmem:[%s2042_s0] sm:$0x3]  ;;  %v18_v28 = vld [vmem:[%s2042_s0 + $0x6] sm:$0x3]  ;;  %v112_v29 = vld [vmem:[%s2043_s1 + $0x2c8] sm:$0xff] }
  0x2b   :  { %1107 = vmatpush.xpose.msk.msra.mxu2 %vm167_vm0, %v60_v41  ;;  %v144_v30 = vld [vmem:[%s2043_s1 + $0x3c8] sm:$0xff]  ;;  %v16_v31 = vld [vmem:[%s2042_s0 + $0x2] sm:$0x3]  ;;  %v94_v36 = vld [vmem:[%s2043_s1 + $0x238] sm:$0xff] }
  0x2c   :  { %1090 = vmatpush.xpose.msk.msra.mxu1 %vm167_vm0, %v44_v42  ;;  %v95_v32 = vld [vmem:[%s2043_s1 + $0x240] sm:$0xff]  ;;  %v126_v37 = vld [vmem:[%s2043_s1 + $0x338] sm:$0xff]  ;;  %v93_v40 = vld [vmem:[%s2043_s1 + $0x230] sm:$0xff] }
  0x2d   :  { %1124 = vmatpush.xpose.msk.msra.mxu3 %vm167_vm0, %v76_v43  ;;  %v127_v33 = vld [vmem:[%s2043_s1 + $0x340] sm:$0xff]  ;;  %v110_v38 = vld [vmem:[%s2043_s1 + $0x2b8] sm:$0xff]  ;;  %v125_v41 = vld [vmem:[%s2043_s1 + $0x330] sm:$0xff] }
  0x2e   :  { %1074 = vmatpush.xpose.msk.msra.mxu0 %vm167_vm0, %v27_v44  ;;  %v111_v34 = vld [vmem:[%s2043_s1 + $0x2c0] sm:$0xff]  ;;  %v142_v39 = vld [vmem:[%s2043_s1 + $0x3b8] sm:$0xff]  ;;  %v109_v42 = vld [vmem:[%s2043_s1 + $0x2b0] sm:$0xff] }
  0x2f   :  { %1108 = vmatpush.xpose.msk.msra.mxu2 %vm167_vm0, %v59_v45  ;;  %v143_v35 = vld [vmem:[%s2043_s1 + $0x3c0] sm:$0xff]  ;;  %v141_v43 = vld [vmem:[%s2043_s1 + $0x3b0] sm:$0xff]  ;;  %v92_v44 = vld [vmem:[%s2043_s1 + $0x228] sm:$0xff] }
  0x30   :  { %1091 = vmatpush.xpose.msk.msra.mxu1 %vm167_vm0, %v43_v46  ;;  %v124_v45 = vld [vmem:[%s2043_s1 + $0x328] sm:$0xff] }
  0x31   :  { %1125 = vmatpush.xpose.msk.msra.mxu3 %vm167_vm0, %v75_v47  ;;  %v108_v46 = vld [vmem:[%s2043_s1 + $0x2a8] sm:$0xff] }
  0x32   :  { %1075 = vmatpush.xpose.msk.msra.mxu0 %vm167_vm0, %v26_v48  ;;  %v140_v47 = vld [vmem:[%s2043_s1 + $0x3a8] sm:$0xff]  ;;  %v91_v48 = vld [vmem:[%s2043_s1 + $0x220] sm:$0xff] }
  0x33   :  { %1109 = vmatpush.xpose.msk.msra.mxu2 %vm167_vm0, %v58_v49  ;;  %v123_v49 = vld [vmem:[%s2043_s1 + $0x320] sm:$0xff] }
  0x34   :  { %1092 = vmatpush.xpose.msk.msra.mxu1 %vm167_vm0, %v42_v50  ;;  %v107_v50 = vld [vmem:[%s2043_s1 + $0x2a0] sm:$0xff] }
  0x35   :  { %1126 = vmatpush.xpose.msk.msra.mxu3 %vm167_vm0, %v74_v51  ;;  %v139_v51 = vld [vmem:[%s2043_s1 + $0x3a0] sm:$0xff] }
  0x36   :  { %1076 = vmatpush.xpose.msk.msra.mxu0 %vm167_vm0, %v25_v52  ;;  %v90_v52 = vld [vmem:[%s2043_s1 + $0x218] sm:$0xff] }
  0x37   :  { %1110 = vmatpush.xpose.msk.msra.mxu2 %vm167_vm0, %v57_v53  ;;  %v122_v53 = vld [vmem:[%s2043_s1 + $0x318] sm:$0xff] }
  0x38   :  { %1093 = vmatpush.xpose.msk.msra.mxu1 %vm167_vm0, %v41_v54  ;;  %v106_v54 = vld [vmem:[%s2043_s1 + $0x298] sm:$0xff] }
  0x39   :  { %1127 = vmatpush.xpose.msk.msra.mxu3 %vm167_vm0, %v73_v55  ;;  %v138_v55 = vld [vmem:[%s2043_s1 + $0x398] sm:$0xff] }
  0x3a   :  { %1077 = vmatpush.xpose.msk.msra.mxu0 %vm167_vm0, %v24_v56  ;;  %v89_v56 = vld [vmem:[%s2043_s1 + $0x210] sm:$0xff] }
  0x3b   :  { %1111 = vmatpush.xpose.msk.msra.mxu2 %vm167_vm0, %v56_v57  ;;  %v121_v57 = vld [vmem:[%s2043_s1 + $0x310] sm:$0xff] }
  0x3c   :  { %1094 = vmatpush.xpose.msk.msra.mxu1 %vm167_vm0, %v40_v58  ;;  %v105_v58 = vld [vmem:[%s2043_s1 + $0x290] sm:$0xff] }
  0x3d   :  { %1128 = vmatpush.xpose.msk.msra.mxu3 %vm167_vm0, %v72_v59  ;;  %v137_v59 = vld [vmem:[%s2043_s1 + $0x390] sm:$0xff] }
  0x3e   :  { %1078 = vmatpush.xpose.msk.msra.mxu0 %vm167_vm0, %v23_v60  ;;  %v88_v60 = vld [vmem:[%s2043_s1 + $0x208] sm:$0xff] }
  0x3f   :  { %1112 = vmatpush.xpose.msk.msra.mxu2 %vm167_vm0, %v55_v61  ;;  %v120_v61 = vld [vmem:[%s2043_s1 + $0x308] sm:$0xff] }
  0x40   :  { %1095 = vmatpush.xpose.msk.msra.mxu1 %vm167_vm0, %v39_v0  ;;  %v87_v0 = vld [vmem:[%s2043_s1 + $0x200] sm:$0xff] }
  0x41   :  { %1129 = vmatpush.xpose.msk.msra.mxu3 %vm167_vm0, %v71_v1  ;;  %1079 = vmatmul.msk.f32.vlgmr.msra.gmra.mxu0 %vm167_vm0, %v15_v27  ;;  %v119_v1 = vld [vmem:[%s2043_s1 + $0x300] sm:$0xff] }
  0x42   :  { %1131 = vmatpush.xpose.msk.msrb.mxu0 %vm167_vm0, %v102_v62  ;;  %1113 = vmatmul.msk.f32.vlgmr.msra.gmra.mxu2 %vm167_vm0, %v17_v24  ;;  %v104_v62 = vld [vmem:[%s2043_s1 + $0x288] sm:$0xff] }
  0x43   :  { %1165 = vmatpush.xpose.msk.msrb.mxu2 %vm167_vm0, %v134_v63  ;;  %1096 = vmatmul.msk.f32.vlgmr.msra.gmra.mxu1 %vm167_vm0, %v16_v31  ;;  %v136_v63 = vld [vmem:[%s2043_s1 + $0x388] sm:$0xff] }
  0x44   :  { %1148 = vmatpush.xpose.msk.msrb.mxu1 %vm167_vm0, %v118_v2  ;;  %1130 = vmatmul.msk.f32.vlgmr.msra.gmra.mxu3 %vm167_vm0, %v18_v28  ;;  %v166_v2 = vld [vmem:[%s2044_s2 + $0x78] sm:$0xff] }
  0x45   :  { %1182 = vmatpush.xpose.msk.msrb.mxu3 %vm167_vm0, %v150_v3  ;;  %v103_v3 = vld [vmem:[%s2043_s1 + $0x280] sm:$0xff] }
  0x46   :  { %1132 = vmatpush.xpose.msk.msrb.mxu0 %vm167_vm0, %v101_v4  ;;  %v135_v4 = vld [vmem:[%s2043_s1 + $0x380] sm:$0xff] }
  0x47   :  { %1166 = vmatpush.xpose.msk.msrb.mxu2 %vm167_vm0, %v133_v5  ;;  %v19_v5 = vld [vmem:[%s2042_s0 + $0x8] sm:$0x3] }
  0x48   :  { %1149 = vmatpush.xpose.msk.msrb.mxu1 %vm167_vm0, %v117_v6  ;;  %v21_v6 = vld [vmem:[%s2042_s0 + $0xc] sm:$0x3] }
  0x49   :  { %1183 = vmatpush.xpose.msk.msrb.mxu3 %vm167_vm0, %v149_v7  ;;  %v165_v7 = vld [vmem:[%s2044_s2 + $0x70] sm:$0xff] }
  0x4a   :  { %1133 = vmatpush.xpose.msk.msrb.mxu0 %vm167_vm0, %v100_v8  ;;  %v20_v8 = vld [vmem:[%s2042_s0 + $0xa] sm:$0x3] }
  0x4b   :  { %1167 = vmatpush.xpose.msk.msrb.mxu2 %vm167_vm0, %v132_v9  ;;  %v22_v9 = vld [vmem:[%s2042_s0 + $0xe] sm:$0x3] }
  0x4c   :  { %1150 = vmatpush.xpose.msk.msrb.mxu1 %vm167_vm0, %v116_v10  ;;  %v164_v10 = vld [vmem:[%s2044_s2 + $0x68] sm:$0xff] }
  0x4d   :  { %1184 = vmatpush.xpose.msk.msrb.mxu3 %vm167_vm0, %v148_v11  ;;  %v163_v11 = vld [vmem:[%s2044_s2 + $0x60] sm:$0xff] }
  0x4e   :  { %1134 = vmatpush.xpose.msk.msrb.mxu0 %vm167_vm0, %v99_v12  ;;  %v162_v12 = vld [vmem:[%s2044_s2 + $0x58] sm:$0xff] }
  0x4f   :  { %1168 = vmatpush.xpose.msk.msrb.mxu2 %vm167_vm0, %v131_v13  ;;  %v161_v13 = vld [vmem:[%s2044_s2 + $0x50] sm:$0xff] }
  0x50   :  { %1151 = vmatpush.xpose.msk.msrb.mxu1 %vm167_vm0, %v115_v14  ;;  %v160_v14 = vld [vmem:[%s2044_s2 + $0x48] sm:$0xff] }
  0x51   :  { %1185 = vmatpush.xpose.msk.msrb.mxu3 %vm167_vm0, %v147_v15  ;;  %v159_v15 = vld [vmem:[%s2044_s2 + $0x40] sm:$0xff] }
  0x52   :  { %1135 = vmatpush.xpose.msk.msrb.mxu0 %vm167_vm0, %v98_v16  ;;  %v158_v16 = vld [vmem:[%s2044_s2 + $0x38] sm:$0xff] }
  0x53   :  { %1169 = vmatpush.xpose.msk.msrb.mxu2 %vm167_vm0, %v130_v17  ;;  %v157_v17 = vld [vmem:[%s2044_s2 + $0x30] sm:$0xff] }
  0x54   :  { %1152 = vmatpush.xpose.msk.msrb.mxu1 %vm167_vm0, %v114_v18  ;;  %v156_v18 = vld [vmem:[%s2044_s2 + $0x28] sm:$0xff] }
  0x55   :  { %1186 = vmatpush.xpose.msk.msrb.mxu3 %vm167_vm0, %v146_v19  ;;  %v155_v19 = vld [vmem:[%s2044_s2 + $0x20] sm:$0xff] }
  0x56   :  { %1136 = vmatpush.xpose.msk.msrb.mxu0 %vm167_vm0, %v97_v20  ;;  %v154_v20 = vld [vmem:[%s2044_s2 + $0x18] sm:$0xff] }
  0x57   :  { %1170 = vmatpush.xpose.msk.msrb.mxu2 %vm167_vm0, %v129_v21  ;;  %v153_v21 = vld [vmem:[%s2044_s2 + $0x10] sm:$0xff] }
  0x58   :  { %1153 = vmatpush.xpose.msk.msrb.mxu1 %vm167_vm0, %v113_v22  ;;  %v152_v22 = vld [vmem:[%s2044_s2 + $0x8] sm:$0xff] }
  0x59   :  { %1187 = vmatpush.xpose.msk.msrb.mxu3 %vm167_vm0, %v145_v23  ;;  %v151_v23 = vld [vmem:[%s2044_s2] sm:$0xff]  ;;  %s1274_s2 = smov [#allocation2]  }
  0x5a   :  { %1137 = vmatpush.xpose.msk.msrb.mxu0 %vm167_vm0, %v96_v25  ;;  %s1052_s16 = sshll.u32 %s1274_s2, 4  ;;  %s1053_s16 = int_to_ptr.vmem [resolvable:$true] %s1052_s16 }
  0x5b   :  { %1171 = vmatpush.xpose.msk.msrb.mxu2 %vm167_vm0, %v128_v26 }
  0x5c   :  { %1154 = vmatpush.xpose.msk.msrb.mxu1 %vm167_vm0, %v112_v29 }
  0x5d   :  { %1188 = vmatpush.xpose.msk.msrb.mxu3 %vm167_vm0, %v144_v30 }
  0x5e   :  { %1138 = vmatpush.xpose.msk.msrb.mxu0 %vm167_vm0, %v95_v32 }
  0x5f   :  { %1172 = vmatpush.xpose.msk.msrb.mxu2 %vm167_vm0, %v127_v33 }
  0x60   :  { %1155 = vmatpush.xpose.msk.msrb.mxu1 %vm167_vm0, %v111_v34 }
  0x61   :  { %1189 = vmatpush.xpose.msk.msrb.mxu3 %vm167_vm0, %v143_v35 }
  0x62   :  { %1139 = vmatpush.xpose.msk.msrb.mxu0 %vm167_vm0, %v94_v36 }
  0x63   :  { %1173 = vmatpush.xpose.msk.msrb.mxu2 %vm167_vm0, %v126_v37 }
  0x64   :  { %1156 = vmatpush.xpose.msk.msrb.mxu1 %vm167_vm0, %v110_v38 }
  0x65   :  { %1190 = vmatpush.xpose.msk.msrb.mxu3 %vm167_vm0, %v142_v39 }
  0x66   :  { %1140 = vmatpush.xpose.msk.msrb.mxu0 %vm167_vm0, %v93_v40 }
  0x67   :  { %1174 = vmatpush.xpose.msk.msrb.mxu2 %vm167_vm0, %v125_v41 }
  0x68   :  { %1157 = vmatpush.xpose.msk.msrb.mxu1 %vm167_vm0, %v109_v42 }
  0x69   :  { %1191 = vmatpush.xpose.msk.msrb.mxu3 %vm167_vm0, %v141_v43 }
  0x6a   :  { %1141 = vmatpush.xpose.msk.msrb.mxu0 %vm167_vm0, %v92_v44 }
  0x6b   :  { %1175 = vmatpush.xpose.msk.msrb.mxu2 %vm167_vm0, %v124_v45 }
  0x6c   :  { %1158 = vmatpush.xpose.msk.msrb.mxu1 %vm167_vm0, %v108_v46 }
  0x6d   :  { %1192 = vmatpush.xpose.msk.msrb.mxu3 %vm167_vm0, %v140_v47 }
  0x6e   :  { %1142 = vmatpush.xpose.msk.msrb.mxu0 %vm167_vm0, %v91_v48 }
  0x6f   :  { %1176 = vmatpush.xpose.msk.msrb.mxu2 %vm167_vm0, %v123_v49 }
  0x70   :  { %1159 = vmatpush.xpose.msk.msrb.mxu1 %vm167_vm0, %v107_v50 }
  0x71   :  { %1193 = vmatpush.xpose.msk.msrb.mxu3 %vm167_vm0, %v139_v51 }
  0x72   :  { %1143 = vmatpush.xpose.msk.msrb.mxu0 %vm167_vm0, %v90_v52 }
  0x73   :  { %1177 = vmatpush.xpose.msk.msrb.mxu2 %vm167_vm0, %v122_v53 }
  0x74   :  { %1160 = vmatpush.xpose.msk.msrb.mxu1 %vm167_vm0, %v106_v54 }
  0x75   :  { %1194 = vmatpush.xpose.msk.msrb.mxu3 %vm167_vm0, %v138_v55 }
  0x76   :  { %1144 = vmatpush.xpose.msk.msrb.mxu0 %vm167_vm0, %v89_v56 }
  0x77   :  { %1178 = vmatpush.xpose.msk.msrb.mxu2 %vm167_vm0, %v121_v57 }
  0x78   :  { %1161 = vmatpush.xpose.msk.msrb.mxu1 %vm167_vm0, %v105_v58 }
  0x79   :  { %1195 = vmatpush.xpose.msk.msrb.mxu3 %vm167_vm0, %v137_v59 }
  0x7a   :  { %1145 = vmatpush.xpose.msk.msrb.mxu0 %vm167_vm0, %v88_v60 }
  0x7b   :  { %1179 = vmatpush.xpose.msk.msrb.mxu2 %vm167_vm0, %v120_v61 }
  0x7c   :  { %1162 = vmatpush.xpose.msk.msrb.mxu1 %vm167_vm0, %v104_v62 }
  0x7d   :  { %1196 = vmatpush.xpose.msk.msrb.mxu3 %vm167_vm0, %v136_v63 }
  0x7e   :  { %1146 = vmatpush.xpose.msk.msrb.mxu0 %vm167_vm0, %v87_v0 }
  0x7f   :  { %1180 = vmatpush.xpose.msk.msrb.mxu2 %vm167_vm0, %v119_v1 }
  0x80   :  { %1163 = vmatpush.xpose.msk.msrb.mxu1 %vm167_vm0, %v103_v3 }
  0x81   :  { %1197 = vmatpush.xpose.msk.msrb.mxu3 %vm167_vm0, %v135_v4  ;;  %1147 = vmatmul.msk.f32.vlgmr.msrb.gmra.mxu0 %vm167_vm0, %v19_v5 }
  0x82   :  { %754 = vmatpush.msra.mxu0 %v166_v2  ;;  %1181 = vmatmul.msk.f32.vlgmr.msrb.gmra.mxu2 %vm167_vm0, %v21_v6 }
  0x83   :  { %1010 = vmatpush.msra.mxu2 %v166_v2  ;;  %1164 = vmatmul.msk.f32.vlgmr.msrb.gmra.mxu1 %vm167_vm0, %v20_v8 }
  0x84   :  { %755 = vmatpush.msra.mxu0 %v165_v7  ;;  %878 = vmatpush.msra.mxu1 %v166_v2 }
  0x85   :  { %1198 = vmatmul.msk.f32.vlgmr.msrb.gmra.mxu3 %vm167_vm0, %v22_v9  ;;  %1011 = vmatpush.msra.mxu2 %v165_v7 }
  0x86   :  { %756 = vmatpush.msra.mxu0 %v164_v10  ;;  %879 = vmatpush.msra.mxu1 %v165_v7 }
  0x87   :  { %1012 = vmatpush.msra.mxu2 %v164_v10 }
  0x88   :  { %757 = vmatpush.msra.mxu0 %v163_v11  ;;  %880 = vmatpush.msra.mxu1 %v164_v10 }
  0x89   :  { %1013 = vmatpush.msra.mxu2 %v163_v11 }
  0x8a   :  { %881 = vmatpush.msra.mxu1 %v163_v11  ;;  %758 = vmatpush.msra.mxu0 %v162_v12 }
  0x8b   :  { %1014 = vmatpush.msra.mxu2 %v162_v12 }
  0x8c   :  { %882 = vmatpush.msra.mxu1 %v162_v12  ;;  %759 = vmatpush.msra.mxu0 %v161_v13 }
  0x8d   :  { %1015 = vmatpush.msra.mxu2 %v161_v13 }
  0x8e   :  { %883 = vmatpush.msra.mxu1 %v161_v13  ;;  %760 = vmatpush.msra.mxu0 %v160_v14 }
  0x8f   :  { %1016 = vmatpush.msra.mxu2 %v160_v14 }
  0x90   :  { %884 = vmatpush.msra.mxu1 %v160_v14  ;;  %761 = vmatpush.msra.mxu0 %v159_v15 }
  0x91   :  { %1017 = vmatpush.msra.mxu2 %v159_v15 }
  0x92   :  { %885 = vmatpush.msra.mxu1 %v159_v15  ;;  %762 = vmatpush.msra.mxu0 %v158_v16 }
  0x93   :  { %1018 = vmatpush.msra.mxu2 %v158_v16 }
  0x94   :  { %886 = vmatpush.msra.mxu1 %v158_v16  ;;  %763 = vmatpush.msra.mxu0 %v157_v17 }
  0x95   :  { %1019 = vmatpush.msra.mxu2 %v157_v17 }
  0x96   :  { %887 = vmatpush.msra.mxu1 %v157_v17  ;;  %764 = vmatpush.msra.mxu0 %v156_v18 }
  0x97   :  { %1020 = vmatpush.msra.mxu2 %v156_v18 }
  0x98   :  { %888 = vmatpush.msra.mxu1 %v156_v18  ;;  %765 = vmatpush.msra.mxu0 %v155_v19 }
  0x99   :  { %1021 = vmatpush.msra.mxu2 %v155_v19 }
  0x9a   :  { %889 = vmatpush.msra.mxu1 %v155_v19  ;;  %766 = vmatpush.msra.mxu0 %v154_v20 }
  0x9b   :  { %1022 = vmatpush.msra.mxu2 %v154_v20 }
  0x9c   :  { %890 = vmatpush.msra.mxu1 %v154_v20  ;;  %767 = vmatpush.msra.mxu0 %v153_v21 }
  0x9d   :  { %1023 = vmatpush.msra.mxu2 %v153_v21 }
  0x9e   :  { %891 = vmatpush.msra.mxu1 %v153_v21  ;;  %768 = vmatpush.msra.mxu0 %v152_v22 }
  0x9f   :  { %1024 = vmatpush.msra.mxu2 %v152_v22 }
  0xa0   :  { %892 = vmatpush.msra.mxu1 %v152_v22  ;;  %769 = vmatpush.msra.mxu0 %v151_v23 }
  0xa1   :  { %1025 = vmatpush.msra.mxu2 %v151_v23 }
  0xa2   :  { %893 = vmatpush.msra.mxu1 %v151_v23 }
  0xbe   :  { %v1889_v25 = vpop.f32.mrf.mxu0 }
  0xbf   :  { %v737_v26 = vsel %vm736_vm1, %v1889_v25, 0.0 }
  0xc0   :  { %v1887_v24 = vpop.f32.mrf.mxu1 }
  0xc1   :  { %v738_v27 = vsel %vm736_vm1, %v1887_v24, 0.0 }
  0xc2   :  { %v739_v29 = vadd.f32 %v738_v27, %v737_v26 }
  0xc5   :  { %v1895_v28 = vpop.f32.mrf.mxu2 }
  0xc6   :  { %v740_v30 = vsel %vm736_vm1, %v1895_v28, 0.0 }
  0xc7   :  { %v1899_v31 = vpop.f32.mrf.mxu3  ;;  %v741_v32 = vadd.f32 %v740_v30, %v739_v29 }
  0xc8   :  { %v742_v33 = vsel %vm736_vm1, %v1899_v31, 0.0 }
  0xc9   :  { %v743_v34 = vadd.f32 %v742_v33, %v741_v32 }
  0xfe   :  { %v1903_v35 = vpop.f32.mrf.mxu0 }
  0xff   :  { %v744_v36 = vsel %vm736_vm1, %v1903_v35, 0.0 }
 0x100   :  { %v745_v37 = vadd.f32 %v744_v36, %v743_v34  ;;  %v1907_v38 = vpop.f32.mrf.mxu1 }
 0x101   :  { %v746_v39 = vsel %vm736_vm1, %v1907_v38, 0.0 }
 0x102   :  { %v747_v40 = vadd.f32 %v746_v39, %v745_v37 }
 0x105   :  { %v1911_v41 = vpop.f32.mrf.mxu2 }
 0x106   :  { %v748_v42 = vsel %vm736_vm1, %v1911_v41, 0.0 }
 0x107   :  { %v749_v44 = vadd.f32 %v748_v42, %v747_v40 }
 0x108   :  { %v1915_v43 = vpop.f32.mrf.mxu3 }
 0x109   :  { %v750_v45 = vsel %vm736_vm1, %v1915_v43, 0.0 }
 0x10a   :  { %v751_v46 = vadd.f32 %v750_v45, %v749_v44 }
 0x10c   :  { %v752_v47 = vmul.f32 0.125, %v751_v46 }
 0x10e   :  { %v753_v48 = vmul.f32 %v752_v47, %v752_v47 }
 0x110   :  { %770 = vmatmul.f32.vlgmr.msra.gmra.mxu0 %v753_v48 }
 0x18d   :  { %v771_v49 = vpop.f32.mrf.mxu0 }
 0x18e   :  { %1200 = vrsqrt.f32 %v771_v49  ;;  %v787_v54 = vadd.f32 1.0, %v771_v49  ;;  %vm781_vm2 = vcmp.eq.f32.partialorder %v771_v49, inf  ;;  %v784_v58 = vand.u32 2147483648, %v771_v49 }
 0x18f   :  { %vm783_vm3 = vcmp.eq.f32.partialorder %v771_v49, 0.0 }
 0x190   :  { %1202 = vrcp.f32 %v787_v54 }
 0x194   :  { %v1201_v50 = vpop.eup %1200 }
 0x195   :  { %v775_v51 = vmul.f32 %v1201_v50, %v771_v49 }
 0x196   :  { %v1203_v62 = vpop.eup %1202 }
 0x197   :  { %v776_v52 = vmul.f32 %v1201_v50, %v775_v51 }
 0x199   :  { %v777_v53 = vmul.f32 0.5, %v776_v52 }
 0x19b   :  { %v778_v55 = vsub.f32 1.5, %v777_v53 }
 0x19d   :  { %v779_v56 = vmul.f32 %v1201_v50, %v778_v55 }
 0x19f   :  { %v780_v57 = vmul.f32 %v779_v56, %v771_v49 }
 0x1a1   :  { %v782_v59 = vsel %vm781_vm2, %v771_v49, %v780_v57 }
 0x1a2   :  { %v785_v60 = vsel %vm783_vm3, %v784_v58, %v782_v59 }
 0x1a3   :  { %v786_v61 = vmul.f32 %v785_v60, %v752_v47 }
 0x1a5   :  { %v789_v63 = vmul.f32 %v1203_v62, %v786_v61 }
 0x1a7   :  { %v1920_v0 = vmul.f32 %v789_v63, %v1889_v25  ;;  %v1923_v1 = vmul.f32 %v789_v63, %v1887_v24  ;;  %v1926_v2 = vmul.f32 %v789_v63, %v1895_v28  ;;  %v1929_v3 = vmul.f32 %v789_v63, %v1899_v31 }
 0x1a8   :  { %v1932_v4 = vmul.f32 %v789_v63, %v1903_v35  ;;  %v1935_v5 = vmul.f32 %v789_v63, %v1907_v38  ;;  %v1938_v6 = vmul.f32 %v789_v63, %v1911_v41  ;;  %v1941_v7 = vmul.f32 %v789_v63, %v1915_v43 }
 0x1a9   :  { %v798_v8 = vsel %vm736_vm1, %v1920_v0, -inf  ;;  %v799_v9 = vsel %vm736_vm1, %v1923_v1, -inf  ;;  %v800_v10 = vsel %vm736_vm1, %v1926_v2, -inf  ;;  %v801_v11 = vsel %vm736_vm1, %v1929_v3, -inf }
 0x1aa   :  { %v802_v12 = vsel %vm736_vm1, %v1932_v4, -inf  ;;  %v804_v13 = vsel %vm736_vm1, %v1935_v5, -inf  ;;  %v806_v14 = vsel %vm736_vm1, %v1938_v6, -inf  ;;  %v808_v15 = vsel %vm736_vm1, %v1941_v7, -inf }
 0x1ab   :  { %v803_v16 = vmax.f32 %v798_v8, %v802_v12  ;;  %v805_v17 = vmax.f32 %v799_v9, %v804_v13  ;;  %v807_v18 = vmax.f32 %v800_v10, %v806_v14  ;;  %v809_v19 = vmax.f32 %v801_v11, %v808_v15 }
 0x1ad   :  { %v810_v20 = vmax.f32 %v803_v16, %v805_v17  ;;  %v811_v21 = vmax.f32 %v807_v18, %v809_v19 }
 0x1af   :  { %v812_v22 = vmax.f32 %v810_v20, %v811_v21 }
 0x1b1   :  { %v813_v23 = vsub.f32 %v1920_v0, %v812_v22  ;;  %v814_v26 = vsub.f32 %v1923_v1, %v812_v22  ;;  %v815_v27 = vsub.f32 %v1926_v2, %v812_v22  ;;  %v816_v29 = vsub.f32 %v1929_v3, %v812_v22 }
 0x1b2   :  { %v817_v30 = vsub.f32 %v1932_v4, %v812_v22  ;;  %v818_v32 = vsub.f32 %v1935_v5, %v812_v22  ;;  %v819_v40 = vsub.f32 %v1938_v6, %v812_v22  ;;  %v820_v44 = vsub.f32 %v1941_v7, %v812_v22 }
 0x1b3   :  { %v821_v33 = vmul.f32 1.442695, %v813_v23  ;;  %v823_v34 = vmul.f32 1.442695, %v814_v26  ;;  %v825_v36 = vmul.f32 1.442695, %v815_v27 }
 0x1b4   :  { %v827_v37 = vmul.f32 1.442695, %v816_v29  ;;  %v829_v39 = vmul.f32 1.442695, %v817_v30  ;;  %v831_v42 = vmul.f32 1.442695, %v818_v32 }
 0x1b5   :  { %1204 = vpow2.f32 %v821_v33  ;;  %v833_v45 = vmul.f32 1.442695, %v819_v40  ;;  %v835_v48 = vmul.f32 1.442695, %v820_v44 }
 0x1b6   :  { %1206 = vpow2.f32 %v823_v34 }
 0x1b7   :  { %1208 = vpow2.f32 %v825_v36 }
 0x1b8   :  { %1210 = vpow2.f32 %v827_v37 }
 0x1b9   :  { %1212 = vpow2.f32 %v829_v39 }
 0x1ba   :  { %1214 = vpow2.f32 %v831_v42 }
 0x1bb   :  { %v1205_v46 = vpop.eup %1204  ;;  %1216 = vpow2.f32 %v833_v45 }
 0x1bc   :  { %v1207_v47 = vpop.eup %1206  ;;  %v837_v49 = vsel %vm736_vm1, %v1205_v46, 0.0  ;;  %v852_v50 = vmul.f32 %v1205_v46, %v1889_v25  ;;  %1218 = vpow2.f32 %v835_v48 }
 0x1bd   :  { %v1209_v51 = vpop.eup %1208  ;;  %v838_v52 = vsel %vm736_vm1, %v1207_v47, 0.0  ;;  %v853_v53 = vmul.f32 %v1207_v47, %v1887_v24 }
 0x1be   :  { %v1211_v54 = vpop.eup %1210  ;;  %v839_v55 = vadd.f32 %v838_v52, %v837_v49  ;;  %v854_v56 = vmul.f32 %v1209_v51, %v1895_v28  ;;  %v860_v57 = vsel %vm736_vm1, %v852_v50, 0.0  ;;  %v840_v59 = vsel %vm736_vm1, %v1209_v51, 0.0 }
 0x1bf   :  { %v1213_v58 = vpop.eup %1212  ;;  %v855_v60 = vmul.f32 %v1211_v54, %v1899_v31  ;;  %v861_v61 = vsel %vm736_vm1, %v853_v53, 0.0  ;;  %v842_v9 = vsel %vm736_vm1, %v1211_v54, 0.0 }
 0x1c0   :  { %v841_v62 = vadd.f32 %v840_v59, %v839_v55  ;;  %v862_v63 = vadd.f32 %v861_v61, %v860_v57  ;;  %v1215_v8 = vpop.eup %1214  ;;  %v856_v10 = vmul.f32 %v1213_v58, %v1903_v35  ;;  %v863_v11 = vsel %vm736_vm1, %v854_v56, 0.0 }
 0x1c1   :  { %v844_v14 = vsel %vm736_vm1, %v1213_v58, 0.0  ;;  %v865_v15 = vsel %vm736_vm1, %v855_v60, 0.0  ;;  %v1217_v16 = vpop.eup %1216  ;;  %v857_v18 = vmul.f32 %v1215_v8, %v1907_v38  ;;  %v846_v20 = vsel %vm736_vm1, %v1215_v8, 0.0 }
 0x1c2   :  { %v843_v12 = vadd.f32 %v842_v9, %v841_v62  ;;  %v864_v13 = vadd.f32 %v863_v11, %v862_v63  ;;  %v867_v21 = vsel %vm736_vm1, %v856_v10, 0.0  ;;  %v1219_v22 = vpop.eup %1218  ;;  %v848_v27 = vsel %vm736_vm1, %v1217_v16, 0.0 }
 0x1c3   :  { %v858_v30 = vmul.f32 %v1217_v16, %v1911_v41  ;;  %v869_v32 = vsel %vm736_vm1, %v857_v18, 0.0  ;;  %v850_v33 = vsel %vm736_vm1, %v1219_v22, 0.0  ;;  %v859_v37 = vmul.f32 %v1219_v22, %v1915_v43 }
 0x1c4   :  { %v845_v17 = vadd.f32 %v844_v14, %v843_v12  ;;  %v866_v19 = vadd.f32 %v865_v15, %v864_v13 }
 0x1c5   :  { %v871_v39 = vsel %vm736_vm1, %v858_v30, 0.0  ;;  %v873_v42 = vsel %vm736_vm1, %v859_v37, 0.0 }
 0x1c6   :  { %v847_v23 = vadd.f32 %v846_v20, %v845_v17  ;;  %v868_v26 = vadd.f32 %v867_v21, %v866_v19 }
 0x1c8   :  { %v849_v29 = vadd.f32 %v848_v27, %v847_v23  ;;  %v870_v34 = vadd.f32 %v869_v32, %v868_v26 }
 0x1ca   :  { %v851_v36 = vadd.f32 %v850_v33, %v849_v29  ;;  %v872_v40 = vadd.f32 %v871_v39, %v870_v34 }
 0x1cc   :  { %1220 = vrcp.f32 %v851_v36  ;;  %v874_v44 = vadd.f32 %v873_v42, %v872_v40 }
 0x1d2   :  { %v1221_v45 = vpop.eup %1220 }
 0x1d3   :  { %v876_v46 = vmul.f32 %v1221_v45, %v874_v44 }
 0x1d5   :  { %v877_v47 = vmul.f32 %v876_v46, %v876_v46 }
 0x1d7   :  { %894 = vmatmul.f32.vlgmr.msra.gmra.mxu1 %v877_v47 }
 0x254   :  { %v895_v48 = vpop.f32.mrf.mxu1 }
 0x255   :  { %1222 = vrsqrt.f32 %v895_v48  ;;  %v911_v53 = vadd.f32 1.0, %v895_v48  ;;  %vm905_vm4 = vcmp.eq.f32.partialorder %v895_v48, inf  ;;  %v908_v57 = vand.u32 2147483648, %v895_v48 }
 0x256   :  { %vm907_vm5 = vcmp.eq.f32.partialorder %v895_v48, 0.0 }
 0x257   :  { %1224 = vrcp.f32 %v911_v53 }
 0x25b   :  { %v1223_v49 = vpop.eup %1222 }
 0x25c   :  { %v899_v50 = vmul.f32 %v1223_v49, %v895_v48 }
 0x25d   :  { %v1225_v61 = vpop.eup %1224 }
 0x25e   :  { %v900_v51 = vmul.f32 %v1223_v49, %v899_v50 }
 0x260   :  { %v901_v52 = vmul.f32 0.5, %v900_v51 }
 0x262   :  { %v902_v54 = vsub.f32 1.5, %v901_v52 }
 0x264   :  { %v903_v55 = vmul.f32 %v1223_v49, %v902_v54 }
 0x266   :  { %v904_v56 = vmul.f32 %v903_v55, %v895_v48 }
 0x268   :  { %v906_v58 = vsel %vm905_vm4, %v895_v48, %v904_v56 }
 0x269   :  { %v909_v59 = vsel %vm907_vm5, %v908_v57, %v906_v58 }
 0x26a   :  { %v910_v60 = vmul.f32 %v909_v59, %v876_v46 }
 0x26c   :  { %v913_v62 = vmul.f32 %v1225_v61, %v910_v60 }
 0x26e   :  { %v914_v63 = vmul.f32 %v913_v62, %v1889_v25  ;;  %v915_v8 = vmul.f32 %v913_v62, %v1887_v24  ;;  %v916_v9 = vmul.f32 %v913_v62, %v1895_v28  ;;  %v917_v10 = vmul.f32 %v913_v62, %v1899_v31 }
 0x26f   :  { %v918_v11 = vmul.f32 %v913_v62, %v1903_v35  ;;  %v919_v12 = vmul.f32 %v913_v62, %v1907_v38  ;;  %v920_v13 = vmul.f32 %v913_v62, %v1911_v41  ;;  %v921_v14 = vmul.f32 %v913_v62, %v1915_v43 }
 0x270   :  { %v922_v15 = vadd.f32 %v914_v63, %v1920_v0  ;;  %v923_v16 = vadd.f32 %v915_v8, %v1923_v1  ;;  %v924_v17 = vadd.f32 %v916_v9, %v1926_v2  ;;  %v925_v18 = vadd.f32 %v917_v10, %v1929_v3 }
 0x271   :  { %v926_v19 = vadd.f32 %v918_v11, %v1932_v4  ;;  %v927_v20 = vadd.f32 %v919_v12, %v1935_v5  ;;  %v928_v21 = vadd.f32 %v920_v13, %v1938_v6  ;;  %v929_v22 = vadd.f32 %v921_v14, %v1941_v7 }
 0x272   :  { %v930_v23 = vsel %vm736_vm1, %v922_v15, -inf  ;;  %v931_v26 = vsel %vm736_vm1, %v923_v16, -inf  ;;  %v932_v0 = vsel %vm736_vm1, %v924_v17, -inf  ;;  %v933_v1 = vsel %vm736_vm1, %v925_v18, -inf }
 0x273   :  { %v934_v2 = vsel %vm736_vm1, %v926_v19, -inf  ;;  %v936_v3 = vsel %vm736_vm1, %v927_v20, -inf  ;;  %v938_v4 = vsel %vm736_vm1, %v928_v21, -inf  ;;  %v940_v5 = vsel %vm736_vm1, %v929_v22, -inf }
 0x274   :  { %v935_v27 = vmax.f32 %v930_v23, %v934_v2  ;;  %v937_v6 = vmax.f32 %v931_v26, %v936_v3  ;;  %v939_v29 = vmax.f32 %v932_v0, %v938_v4  ;;  %v941_v7 = vmax.f32 %v933_v1, %v940_v5 }
 0x276   :  { %v942_v30 = vmax.f32 %v935_v27, %v937_v6  ;;  %v943_v32 = vmax.f32 %v939_v29, %v941_v7 }
 0x278   :  { %v944_v33 = vmax.f32 %v942_v30, %v943_v32 }
 0x27a   :  { %v945_v34 = vsub.f32 %v922_v15, %v944_v33  ;;  %v946_v36 = vsub.f32 %v923_v16, %v944_v33  ;;  %v947_v37 = vsub.f32 %v924_v17, %v944_v33  ;;  %v948_v39 = vsub.f32 %v925_v18, %v944_v33 }
 0x27b   :  { %v949_v40 = vsub.f32 %v926_v19, %v944_v33  ;;  %v950_v42 = vsub.f32 %v927_v20, %v944_v33  ;;  %v951_v49 = vsub.f32 %v928_v21, %v944_v33  ;;  %v952_v51 = vsub.f32 %v929_v22, %v944_v33 }
 0x27c   :  { %v953_v44 = vmul.f32 1.442695, %v945_v34  ;;  %v955_v45 = vmul.f32 1.442695, %v946_v36  ;;  %v957_v46 = vmul.f32 1.442695, %v947_v37 }
 0x27d   :  { %v959_v47 = vmul.f32 1.442695, %v948_v39  ;;  %v961_v48 = vmul.f32 1.442695, %v949_v40  ;;  %v963_v50 = vmul.f32 1.442695, %v950_v42 }
 0x27e   :  { %1226 = vpow2.f32 %v953_v44  ;;  %v965_v52 = vmul.f32 1.442695, %v951_v49  ;;  %v967_v55 = vmul.f32 1.442695, %v952_v51 }
 0x27f   :  { %1228 = vpow2.f32 %v955_v45 }
 0x280   :  { %1230 = vpow2.f32 %v957_v46 }
 0x281   :  { %1232 = vpow2.f32 %v959_v47 }
 0x282   :  { %1234 = vpow2.f32 %v961_v48 }
 0x283   :  { %1236 = vpow2.f32 %v963_v50 }
 0x284   :  { %v1227_v53 = vpop.eup %1226  ;;  %1238 = vpow2.f32 %v965_v52 }
 0x285   :  { %v1229_v54 = vpop.eup %1228  ;;  %v969_v56 = vsel %vm736_vm1, %v1227_v53, 0.0  ;;  %v984_v57 = vmul.f32 %v1227_v53, %v1889_v25  ;;  %1240 = vpow2.f32 %v967_v55 }
 0x286   :  { %v1231_v58 = vpop.eup %1230  ;;  %v970_v59 = vsel %vm736_vm1, %v1229_v54, 0.0  ;;  %v985_v60 = vmul.f32 %v1229_v54, %v1887_v24 }
 0x287   :  { %v1233_v61 = vpop.eup %1232  ;;  %v971_v62 = vadd.f32 %v970_v59, %v969_v56  ;;  %v986_v63 = vmul.f32 %v1231_v58, %v1895_v28  ;;  %v992_v8 = vsel %vm736_vm1, %v984_v57, 0.0  ;;  %v972_v10 = vsel %vm736_vm1, %v1231_v58, 0.0 }
 0x288   :  { %v1235_v9 = vpop.eup %1234  ;;  %v987_v11 = vmul.f32 %v1233_v61, %v1899_v31  ;;  %v993_v12 = vsel %vm736_vm1, %v985_v60, 0.0  ;;  %v974_v24 = vsel %vm736_vm1, %v1233_v61, 0.0 }
 0x289   :  { %v973_v25 = vadd.f32 %v972_v10, %v971_v62  ;;  %v994_v13 = vadd.f32 %v993_v12, %v992_v8  ;;  %v1237_v14 = vpop.eup %1236  ;;  %v988_v15 = vmul.f32 %v1235_v9, %v1903_v35  ;;  %v995_v16 = vsel %vm736_vm1, %v986_v63, 0.0 }
 0x28a   :  { %v976_v18 = vsel %vm736_vm1, %v1235_v9, 0.0  ;;  %v997_v19 = vsel %vm736_vm1, %v987_v11, 0.0  ;;  %v1239_v20 = vpop.eup %1238  ;;  %v989_v21 = vmul.f32 %v1237_v14, %v1907_v38  ;;  %v978_v23 = vsel %vm736_vm1, %v1237_v14, 0.0 }
 0x28b   :  { %v975_v28 = vadd.f32 %v974_v24, %v973_v25  ;;  %v996_v17 = vadd.f32 %v995_v16, %v994_v13  ;;  %v999_v26 = vsel %vm736_vm1, %v988_v15, 0.0  ;;  %v1241_v0 = vpop.eup %1240  ;;  %v980_v2 = vsel %vm736_vm1, %v1239_v20, 0.0 }
 0x28c   :  { %v990_v4 = vmul.f32 %v1239_v20, %v1911_v41  ;;  %v1001_v5 = vsel %vm736_vm1, %v989_v21, 0.0  ;;  %v982_v27 = vsel %vm736_vm1, %v1241_v0, 0.0  ;;  %v991_v38 = vmul.f32 %v1241_v0, %v1915_v43 }
 0x28d   :  { %v977_v31 = vadd.f32 %v976_v18, %v975_v28  ;;  %v998_v22 = vadd.f32 %v997_v19, %v996_v17 }
 0x28e   :  { %v1003_v7 = vsel %vm736_vm1, %v990_v4, 0.0  ;;  %v1005_v32 = vsel %vm736_vm1, %v991_v38, 0.0 }
 0x28f   :  { %v979_v1 = vadd.f32 %v978_v23, %v977_v31  ;;  %v1000_v35 = vadd.f32 %v999_v26, %v998_v22 }
 0x291   :  { %v981_v3 = vadd.f32 %v980_v2, %v979_v1  ;;  %v1002_v6 = vadd.f32 %v1001_v5, %v1000_v35 }
 0x293   :  { %v983_v29 = vadd.f32 %v982_v27, %v981_v3  ;;  %v1004_v30 = vadd.f32 %v1003_v7, %v1002_v6 }
 0x295   :  { %1242 = vrcp.f32 %v983_v29  ;;  %v1006_v33 = vadd.f32 %v1005_v32, %v1004_v30 }
 0x29b   :  { %v1243_v34 = vpop.eup %1242 }
 0x29c   :  { %v1008_v36 = vmul.f32 %v1243_v34, %v1006_v33 }
 0x29e   :  { %v1009_v37 = vmul.f32 %v1008_v36, %v1008_v36 }
 0x2a0   :  { %1026 = vmatmul.f32.vlgmr.msra.gmra.mxu2 %v1009_v37 }
 0x323   :  { %v1027_v41 = vpop.f32.mrf.mxu2 }
 0x324   :  { %1244 = vrsqrt.f32 %v1027_v41  ;;  %v1043_v45 = vadd.f32 1.0, %v1027_v41  ;;  %vm1037_vm6 = vcmp.eq.f32.partialorder %v1027_v41, inf  ;;  %v1040_v48 = vand.u32 2147483648, %v1027_v41 }
 0x325   :  { %vm1039_vm7 = vcmp.eq.f32.partialorder %v1027_v41, 0.0 }
 0x326   :  { %1246 = vrcp.f32 %v1043_v45 }
 0x32a   :  { %v1245_v39 = vpop.eup %1244 }
 0x32b   :  { %v1031_v40 = vmul.f32 %v1245_v39, %v1027_v41 }
 0x32c   :  { %v1247_v52 = vpop.eup %1246 }
 0x32d   :  { %v1032_v42 = vmul.f32 %v1245_v39, %v1031_v40 }
 0x32f   :  { %v1033_v44 = vmul.f32 0.5, %v1032_v42 }
 0x331   :  { %v1034_v46 = vsub.f32 1.5, %v1033_v44 }
 0x333   :  { %v1035_v43 = vmul.f32 %v1245_v39, %v1034_v46 }
 0x335   :  { %v1036_v47 = vmul.f32 %v1035_v43, %v1027_v41 }
 0x337   :  { %v1038_v49 = vsel %vm1037_vm6, %v1027_v41, %v1036_v47 }
 0x338   :  { %v1041_v50 = vsel %vm1039_vm7, %v1040_v48, %v1038_v49 }
 0x339   :  { %v1042_v51 = vmul.f32 %v1041_v50, %v1008_v36 }
 0x33b   :  { %v1045_v53 = vmul.f32 %v1247_v52, %v1042_v51 }
 0x33d   :  { %1046 = vst [vmem:[#allocation2] sm:$0x3] %v1045_v53 }
 0x33e   :  { %1057 = dma.vmem_to_hbm [thread:$0]  %s1053_s16, 32, %s1055_s19, [#allocation3]  }
 0x33f   :  { %1272 = dma.done.wait [#allocation3], 32  }
 0x340   :  { %1273 = vsyncadd [#allocation3], 4294967264 }
 0x341   :  { %1062 = vsyncpa [#allocation3], 1 }

</bundles_post_ra>
